<compile_context>
chip_gen: v7x
topology: tpu7x:2x2x1
jax: 0.10.0
libtpu: 0.0.40
codegen_flags: <defaults>
</compile_context>

<pallas_src>
import functools

import jax
import jax.numpy as jnp
from jax.experimental import pallas as pl
from jax.experimental.pallas import tpu as pltpu

HID_PAD = 128   # padded hidden width (lane-dense); real hidden = 100
HID = 100
IN_DIM = 3


def _round_up(x, m):
    return ((x + m - 1) // m) * m


def actor_kernel(x_ref, w1_ref, b1_ref, wh_ref, bh_ref, out_ref):
    x = x_ref[...]                                              # (TB, 3)

    # fc + ReLU  (MXU matmul, f32 accumulate). Padded cols (>=100) of w1/b1
    # are zero, so h[:, 100:] == 0 exactly.
    h = jnp.dot(x, w1_ref[...], preferred_element_type=jnp.float32)
    h = jnp.maximum(h + b1_ref[...], 0.0)                       # (TB, 128)

    # Fused heads: single (128, 128) matmul. Column 0 = mu head, column 1 =
    # sigma head, remaining columns are zero weights/bias (garbage lanes get
    # sliced away in the wrapper).
    z = jnp.dot(h, wh_ref[...], preferred_element_type=jnp.float32)
    z = z + bh_ref[...]                                         # (TB, 128)

    col = jax.lax.broadcasted_iota(jnp.int32, z.shape, 1)
    mu_all = 2.0 * jnp.tanh(z)                                  # EUP
    sig_all = jnp.logaddexp(z, 0.0)                             # stable softplus
    out_ref[...] = jnp.where(col == 0, mu_all, sig_all).astype(out_ref.dtype)


def pack_params(params):
    """Zero-pad and fuse the (transposed-vs-PyTorch) params for the kernel."""
    w1, b1 = params["w1"], params["b1"]            # (3, 100), (1, 100)
    w2, b2 = params["w2"], params["b2"]            # (100, 1), (1, 1)
    w3, b3 = params["w3"], params["b3"]            # (100, 1), (1, 1)

    w1p = jnp.zeros((IN_DIM, HID_PAD), jnp.float32).at[:, :HID].set(w1)
    b1p = jnp.zeros((1, HID_PAD), jnp.float32).at[:, :HID].set(b1)

    wh = jnp.zeros((HID_PAD, HID_PAD), jnp.float32)
    wh = wh.at[:HID, 0].set(w2[:, 0]).at[:HID, 1].set(w3[:, 0])
    bh = jnp.zeros((1, HID_PAD), jnp.float32)
    bh = bh.at[0, 0].set(b2[0, 0]).at[0, 1].set(b3[0, 0])

    return {"w1": w1p, "b1": b1p, "wh": wh, "bh": bh}


@functools.partial(jax.jit, static_argnames=("tb",))
def actor_forward(x, packed, *, tb=512):
    """x: (B, 3) float32. packed: output of pack_params. Returns (mu, sigma)."""
    B = x.shape[0]

    # Batch tile: multiple of 8 sublanes, capped at `tb`; pad batch to fit.
    TB = min(tb, _round_up(B, 8))
    Bp = _round_up(B, TB)
    if Bp != B:
        x = jnp.pad(x, ((0, Bp - B), (0, 0)))
    grid = (Bp // TB,)

    flops = 2 * Bp * (IN_DIM * HID_PAD + HID_PAD * HID_PAD)
    bytes_accessed = (
        Bp * IN_DIM * 4                                   # x
        + (IN_DIM * HID_PAD + HID_PAD + HID_PAD * HID_PAD + HID_PAD) * 4  # weights
        + Bp * HID_PAD * 4                                # output slab
    )

    out = pl.pallas_call(
        actor_kernel,
        out_shape=jax.ShapeDtypeStruct((Bp, HID_PAD), jnp.float32),
        grid_spec=pltpu.PrefetchScalarGridSpec(
            num_scalar_prefetch=0,
            grid=grid,
            in_specs=[
                pl.BlockSpec((TB, IN_DIM), lambda i: (i, 0)),        # x tile
                pl.BlockSpec((IN_DIM, HID_PAD), lambda i: (0, 0)),   # w1 (resident)
                pl.BlockSpec((1, HID_PAD), lambda i: (0, 0)),        # b1 (resident)
                pl.BlockSpec((HID_PAD, HID_PAD), lambda i: (0, 0)),  # fused heads W
                pl.BlockSpec((1, HID_PAD), lambda i: (0, 0)),        # fused heads b
            ],
            out_specs=pl.BlockSpec((TB, HID_PAD), lambda i: (i, 0)),
        ),
        compiler_params=pltpu.CompilerParams(
            dimension_semantics=("parallel",),
        ),
        cost_estimate=pl.CostEstimate(
            flops=flops,
            transcendentals=3 * Bp * HID_PAD,   # tanh + exp + log per lane
            bytes_accessed=bytes_accessed,
        ),
    )(x, packed["w1"], packed["b1"], packed["wh"], packed["bh"])

    mu = out[:B, 0:1]
    sigma = out[:B, 1:2]
    return mu, sigma


def init_params(key):
    """Deterministic synthetic init matching nn.Linear shapes.

    PyTorch stores Linear weights as (out, in); here they are kept transposed
    as (in, out) so the kernel does x @ W directly.
    """
    k1, k2, k3, k4, k5, k6 = jax.random.split(key, 6)
    scale1 = 1.0 / jnp.sqrt(3.0)     # fan_in = 3
    scale2 = 1.0 / jnp.sqrt(100.0)   # fan_in = 100
    return {
        "w1": jax.random.uniform(k1, (3, 100), jnp.float32, -scale1, scale1),
        "b1": jax.random.uniform(k2, (1, 100), jnp.float32, -scale1, scale1),
        "w2": jax.random.uniform(k3, (100, 1), jnp.float32, -scale2, scale2),
        "b2": jax.random.uniform(k4, (1, 1), jnp.float32, -scale2, scale2),
        "w3": jax.random.uniform(k5, (100, 1), jnp.float32, -scale2, scale2),
        "b3": jax.random.uniform(k6, (1, 1), jnp.float32, -scale2, scale2),
    }


def actor_reference(x, params):
    h = jnp.maximum(x @ params["w1"] + params["b1"], 0.0)
    mu = 2.0 * jnp.tanh(h @ params["w2"] + params["b2"])
    sigma = jnp.logaddexp(h @ params["w3"] + params["b3"], 0.0)
    return mu, sigma


if __name__ == "__main__":
    key = jax.random.PRNGKey(0)
    kx, kp = jax.random.split(key)

    B = 8  # small batch
    x = jax.random.normal(kx, (B, 3), dtype=jnp.float32)
    params = init_params(kp)
    packed = pack_params(params)

    mu, sigma = actor_forward(x, packed)
    jax.block_until_ready((mu, sigma))

    mu_ref, sigma_ref = actor_reference(x, params)
    assert mu.shape == (B, 1) and sigma.shape == (B, 1)
    assert jnp.allclose(mu, mu_ref, atol=1e-5, rtol=1e-5)
    assert jnp.allclose(sigma, sigma_ref, atol=1e-5, rtol=1e-5)

    print("KERNEL_OK")
</pallas_src>

<mosaic_0001>
module attributes {stable_mosaic.version = 11 : i64} {
  func.func @actor_kernel(%arg0: i32, %arg1: memref<8x3xf32, #tpu.memory_space<vmem>>, %arg2: memref<3x128xf32, #tpu.memory_space<vmem>>, %arg3: memref<1x128xf32, #tpu.memory_space<vmem>>, %arg4: memref<128x128xf32, #tpu.memory_space<vmem>>, %arg5: memref<1x128xf32, #tpu.memory_space<vmem>>, %arg6: memref<8x128xf32, #tpu.memory_space<vmem>>) attributes {dimension_semantics = [#tpu.dimension_semantics<parallel>], iteration_bounds = array<i64: 1>, scalar_prefetch = 0 : i64, scratch_operands = 0 : i64, tpu.core_type = #tpu.core_type<tc>, window_params = [{transform_indices = @transform_0, window_bounds = array<i64: 8, 3>}, {pipeline_mode = #tpu.pipeline_mode<synchronous>, transform_indices = @transform_1, window_bounds = array<i64: 3, 128>}, {pipeline_mode = #tpu.pipeline_mode<synchronous>, transform_indices = @transform_2, window_bounds = array<i64: 1, 128>}, {pipeline_mode = #tpu.pipeline_mode<synchronous>, transform_indices = @transform_3, window_bounds = array<i64: 128, 128>}, {pipeline_mode = #tpu.pipeline_mode<synchronous>, transform_indices = @transform_4, window_bounds = array<i64: 1, 128>}, {transform_indices = @transform_5, window_bounds = array<i64: 8, 128>}]} {
    %c0 = arith.constant 0 : index
    %c0_0 = arith.constant 0 : index
    %0 = vector.load %arg1[%c0, %c0_0] : memref<8x3xf32, #tpu.memory_space<vmem>>, vector<8x3xf32>
    %c0_1 = arith.constant 0 : index
    %c0_2 = arith.constant 0 : index
    %1 = vector.load %arg2[%c0_1, %c0_2] : memref<3x128xf32, #tpu.memory_space<vmem>>, vector<3x128xf32>
    %cst = arith.constant dense<0.000000e+00> : vector<8x128xf32>
    %2 = tpu.matmul %0, %1, %cst {dimension_numbers = #tpu.dot_dimension_numbers<[1], [0], [0], [1], [0, 0, 1, 1], [], []>} : vector<8x3xf32>, vector<3x128xf32>, vector<8x128xf32> -> vector<8x128xf32>
    %c0_3 = arith.constant 0 : index
    %c0_4 = arith.constant 0 : index
    %3 = vector.load %arg3[%c0_3, %c0_4] : memref<1x128xf32, #tpu.memory_space<vmem>>, vector<1x128xf32>
    %4 = vector.broadcast %3 : vector<1x128xf32> to vector<8x128xf32>
    %5 = arith.addf %2, %4 : vector<8x128xf32>
    %cst_5 = arith.constant 0.000000e+00 : f32
    %6 = vector.broadcast %cst_5 : f32 to vector<8x128xf32>
    %7 = arith.maximumf %5, %6 : vector<8x128xf32>
    %c0_6 = arith.constant 0 : index
    %c0_7 = arith.constant 0 : index
    %8 = vector.load %arg4[%c0_6, %c0_7] : memref<128x128xf32, #tpu.memory_space<vmem>>, vector<128x128xf32>
    %cst_8 = arith.constant dense<0.000000e+00> : vector<8x128xf32>
    %9 = tpu.matmul %7, %8, %cst_8 {dimension_numbers = #tpu.dot_dimension_numbers<[1], [0], [0], [1], [0, 0, 1, 1], [], []>} : vector<8x128xf32>, vector<128x128xf32>, vector<8x128xf32> -> vector<8x128xf32>
    %c0_9 = arith.constant 0 : index
    %c0_10 = arith.constant 0 : index
    %10 = vector.load %arg5[%c0_9, %c0_10] : memref<1x128xf32, #tpu.memory_space<vmem>>, vector<1x128xf32>
    %11 = vector.broadcast %10 : vector<1x128xf32> to vector<8x128xf32>
    %12 = arith.addf %9, %11 : vector<8x128xf32>
    %13 = tpu.iota {dimensions = array<i32: 1>} : vector<8x128xi32>
    %14 = math.tanh %12 : vector<8x128xf32>
    %cst_11 = arith.constant 2.000000e+00 : f32
    %15 = vector.broadcast %cst_11 : f32 to vector<8x128xf32>
    %16 = arith.mulf %15, %14 : vector<8x128xf32>
    %cst_12 = arith.constant 0.000000e+00 : f32
    %17 = vector.broadcast %cst_12 : f32 to vector<8x128xf32>
    %18 = arith.maximumf %12, %17 : vector<8x128xf32>
    %19 = vector.broadcast %cst_12 : f32 to vector<8x128xf32>
    %20 = arith.subf %12, %19 : vector<8x128xf32>
    %21 = arith.cmpf one, %20, %20 : vector<8x128xf32>
    %22 = vector.broadcast %cst_12 : f32 to vector<8x128xf32>
    %23 = arith.addf %12, %22 : vector<8x128xf32>
    %24 = math.absf %20 : vector<8x128xf32>
    %cst_13 = arith.constant 0.000000e+00 : f32
    %25 = vector.broadcast %cst_13 : f32 to vector<8x128xf32>
    %26 = arith.subf %25, %24 : vector<8x128xf32>
    %27 = math.exp %26 : vector<8x128xf32>
    %28 = math.log1p %27 : vector<8x128xf32>
    %29 = arith.addf %18, %28 : vector<8x128xf32>
    %30 = arith.select %21, %23, %29 : vector<8x128xi1>, vector<8x128xf32>
    %c0_i32 = arith.constant 0 : i32
    %31 = vector.broadcast %c0_i32 : i32 to vector<8x128xi32>
    %32 = arith.cmpi eq, %13, %31 : vector<8x128xi32>
    %33 = arith.select %32, %16, %30 : vector<8x128xi1>, vector<8x128xf32>
    %c0_14 = arith.constant 0 : index
    %c0_15 = arith.constant 0 : index
    %34 = vector.load %arg6[%c0_14, %c0_15] : memref<8x128xf32, #tpu.memory_space<vmem>>, vector<8x128xf32>
    tpu.vector_store %arg6[%c0_14, %c0_15], %33 {strides = array<i32>} : memref<8x128xf32, #tpu.memory_space<vmem>>, vector<8x128xf32>,
    return
  }
  func.func @transform_0(%arg0: i32) -> (i32, i32) {
    %c0_i32 = arith.constant 0 : i32
    %c0_i32_0 = arith.constant 0 : i32
    return %arg0, %c0_i32 : i32, i32
  }
  func.func @transform_1(%arg0: i32) -> (i32, i32) {
    %c0_i32 = arith.constant 0 : i32
    %c0_i32_0 = arith.constant 0 : i32
    %c0_i32_1 = arith.constant 0 : i32
    return %c0_i32, %c0_i32_0 : i32, i32
  }
  func.func @transform_2(%arg0: i32) -> (i32, i32) {
    %c0_i32 = arith.constant 0 : i32
    %c0_i32_0 = arith.constant 0 : i32
    %c0_i32_1 = arith.constant 0 : i32
    return %c0_i32, %c0_i32_0 : i32, i32
  }
  func.func @transform_3(%arg0: i32) -> (i32, i32) {
    %c0_i32 = arith.constant 0 : i32
    %c0_i32_0 = arith.constant 0 : i32
    %c0_i32_1 = arith.constant 0 : i32
    return %c0_i32, %c0_i32_0 : i32, i32
  }
  func.func @transform_4(%arg0: i32) -> (i32, i32) {
    %c0_i32 = arith.constant 0 : i32
    %c0_i32_0 = arith.constant 0 : i32
    %c0_i32_1 = arith.constant 0 : i32
    return %c0_i32, %c0_i32_0 : i32, i32
  }
  func.func @transform_5(%arg0: i32) -> (i32, i32) {
    %c0_i32 = arith.constant 0 : i32
    %c0_i32_0 = arith.constant 0 : i32
    return %arg0, %c0_i32 : i32, i32
  }
}

</mosaic_0001>

<bundles_post_ra>
// kernel: actor_forward.1
= control target key start
LH: loop header
LB: loop body
LE: loop exit
PB: predicated region body
PF: predicated region fallthrough
CT: control target
= control target key end

     0   :  { %10 = vsyncpa [#allocation3], 0  ;;  %s368_s18 = smov [#allocation2]   ;;  %s431_s0 = inlined_call_operand.vmem [shape: f32[8,3], index: 0, kind: input, shape index: {}]   ;;  %s432_s1 = inlined_call_operand.vmem [shape: f32[3,128], index: 1, kind: input, shape index: {}]   ;;  %s433_s2 = inlined_call_operand.vmem [shape: f32[1,128], index: 2, kind: input, shape index: {}]   ;;  %s434_s3 = inlined_call_operand.hbm [shape: f32[128,128], index: 3, kind: input, shape index: {}]   ;;  %s435_s4 = inlined_call_operand.vmem [shape: f32[1,128], index: 4, kind: input, shape index: {}]   ;;  %s436_s5 = inlined_call_operand.vmem [shape: f32[8,128], index: 5, kind: output, shape index: {}]  }
   0x1   :  { %s22_s19 = sshll.u32 %s368_s18, 4  ;;  %s344_s22 = scalar_lea.hbm %s434_s3, 2048  ;;  %s23_s19 = int_to_ptr.vmem [resolvable:$true] %s22_s19 }
   0x2   :  { %p345_p0 = scmp.ne.s32.totalorder %s434_s3, %s344_s22  ;;  %p348_p1 = scmp.lt.u32.totalorder %s344_s22, %s434_s3 }
   0x4   :  { %p350_p2 = pnand %p348_p1, %p345_p0 }
   0x6   :  { %353 = shalt.err (!%p350_p2)
}
   0x7   :  { %s354_s27 = scalar_lea.vmem %s23_s19, 2048  ;;  %p359_p4 = scmp.lt.s32.totalorder %s23_s19, %s23_s19 }
   0x8   :  { %p355_p3 = scmp.ne.s32.totalorder %s23_s19, %s354_s27  ;;  %p360_p5 = scmp.lt.s32.totalorder %s354_s27, %s354_s27 }
   0xa   :  { %p361_p6 = por %p360_p5, %p359_p4 }
   0xc   :  { %p362_p7 = pnand %p361_p6, %p355_p3 }
   0xe   :  { %365 = shalt.err (!%p362_p7)
}
   0xf   :  { %s369_s28 = smov 128   ;;  %s370_s29 = smov 8  }
  0x10   :  { %28 = dma.hbm_to_vmem [thread:$0]  %s434_s3, 2048, %s23_s19, [#allocation3], %s369_s28, %s369_s28, %s370_s29  }
  0x11   :  { %366 = dma.done.wait [#allocation3], 2048  }
  0x12   :  { %367 = vsyncadd [#allocation3], 4294965248  ;;  %v371_v0 = vmov 0.0   ;;  %vm372_vm0 = vmmov 0   ;;  %v373_v1 = vmov 0.0|0.0   ;;  %vm47_vm1 = vcmask 1042432  }
  0x13   :  { %268 = vmatprep.subr.mxu0 %v371_v0  ;;  %270 = vmatprep.mubr.msk.f32.mxu0 %vm372_vm0, %v371_v0  ;;  %vm43_vm2 = vcmask 23552   ;;  %v35_v2 = vld [vmem:[%s432_s1] sm:$0x7]  ;;  %v123_v5 = vld [vmem:[#allocation2 + $0x8] sm:$0xff]  ;;  %v124_v6 = vld [vmem:[#allocation2 + $0x10] sm:$0xff]  ;;  %v215_v43 = vlaneseq }
  0x14   :  { %308 = vmatprep.subr.bf16.mxu1 %v373_v1  ;;  %305 = vmatprep.mubr.msk.f32.mxu1 %vm372_vm0, %v371_v0  ;;  %v34_v3 = vld [vmem:[%s431_s0] sm:$0xff]  ;;  %v125_v7 = vld [vmem:[#allocation2 + $0x18] sm:$0xff]  ;;  %v127_v11 = vld [vmem:[#allocation2 + $0x28] sm:$0xff] }
  0x15   :  { %v122_v4 = vld [vmem:[#allocation2] sm:$0xff]  ;;  %269 = vmatpush3.msk.msra.mxu0 %vm47_vm1, %v35_v2  ;;  %v312_v9 = vpack.c.bf16 %v125_v7, %v124_v6  ;;  %v128_v13 = vld [vmem:[#allocation2 + $0x30] sm:$0xff]  ;;  %v129_v14 = vld [vmem:[#allocation2 + $0x38] sm:$0xff]  ;;  %v216_v47 = vand.u32 127, %v215_v43 }
  0x16   :  { %271 = vmatmul.mubr.msk.f32.vlgmr.msra.gmra.mrb[0].mxu0 %vm43_vm2, %v34_v3  ;;  %v309_v8 = vpack.c.bf16 %v123_v5, %v122_v4  ;;  %v126_v10 = vld [vmem:[#allocation2 + $0x20] sm:$0xff]  ;;  %v318_v15 = vpack.c.bf16 %v129_v14, %v128_v13  ;;  %v131_v17 = vld [vmem:[#allocation2 + $0x48] sm:$0xff]  ;;  %v132_v19 = vld [vmem:[#allocation2 + $0x50] sm:$0xff] }
  0x17   :  { %v315_v12 = vpack.c.bf16 %v127_v11, %v126_v10  ;;  %v130_v16 = vld [vmem:[#allocation2 + $0x40] sm:$0xff]  ;;  %v133_v20 = vld [vmem:[#allocation2 + $0x58] sm:$0xff]  ;;  %v135_v23 = vld [vmem:[#allocation2 + $0x68] sm:$0xff]  ;;  %vm237_vm4 = vcmp.eq.s32.totalorder %v216_v47, 0 }
  0x18   :  { %310 = vmatpush3.bf16.msra.mxu1 %v309_v8  ;;  %v321_v18 = vpack.c.bf16 %v131_v17, %v130_v16  ;;  %v324_v21 = vpack.c.bf16 %v133_v20, %v132_v19  ;;  %v134_v22 = vld [vmem:[#allocation2 + $0x60] sm:$0xff]  ;;  %v136_v25 = vld [vmem:[#allocation2 + $0x70] sm:$0xff]  ;;  %v137_v26 = vld [vmem:[#allocation2 + $0x78] sm:$0xff] }
  0x19   :  { %311 = vmatprep.subr.bf16.mxu1 %v373_v1  ;;  %v327_v24 = vpack.c.bf16 %v135_v23, %v134_v22  ;;  %v330_v27 = vpack.c.bf16 %v137_v26, %v136_v25  ;;  %v245_v28 = vld [vmem:[%s433_s2] ss:$0 sm:$0xff] }
  0x1a   :  { %v248_v33 = vld [vmem:[%s435_s4] ss:$0 sm:$0xff] }
  0x1c   :  { %313 = vmatpush3.bf16.msra.mxu1 %v312_v9 }
  0x1d   :  { %314 = vmatprep.subr.bf16.mxu1 %v373_v1 }
  0x20   :  { %316 = vmatpush3.bf16.msra.mxu1 %v315_v12 }
  0x21   :  { %317 = vmatprep.subr.bf16.mxu1 %v373_v1 }
  0x24   :  { %319 = vmatpush3.bf16.msra.mxu1 %v318_v15 }
  0x25   :  { %320 = vmatprep.subr.bf16.mxu1 %v373_v1 }
  0x28   :  { %322 = vmatpush3.bf16.msra.mxu1 %v321_v18 }
  0x29   :  { %323 = vmatprep.subr.bf16.mxu1 %v373_v1 }
  0x2c   :  { %325 = vmatpush3.bf16.msra.mxu1 %v324_v21 }
  0x2d   :  { %326 = vmatprep.subr.bf16.mxu1 %v373_v1 }
  0x30   :  { %328 = vmatpush3.bf16.msra.mxu1 %v327_v24 }
  0x31   :  { %329 = vmatprep.subr.bf16.mxu1 %v373_v1 }
  0x34   :  { %331 = vmatpush3.bf16.msra.mxu1 %v330_v27 }
  0xe9   :  { %v117_v29 = vpop.f32.mrb[0].mxu0 }
  0xea   :  { %v118_v30 = vadd.f32 %v245_v28, %v117_v29  ;;  %v272_v31 = vpop.f32.mrb[1].mxu0 }
  0xec   :  { %v121_v32 = vmax.f32 %v118_v30, 0.0 }
  0xee   :  { %306 = vmatmul.mubr.f32.vlgmr.msra.gmra.mrb[0].mxu1 %v121_v32 }
 0x1c1   :  { %v211_v34 = vpop.f32.mrb[0].mxu1 }
 0x1c2   :  { %v212_v35 = vadd.f32 %v248_v33, %v211_v34  ;;  %v307_v36 = vpop.f32.mrb[1].mxu1 }
 0x1c4   :  { %v222_v37 = vand.u32 2147483647, %v212_v35  ;;  %v219_v51 = vmax.f32 %v212_v35, 0.0  ;;  %vm220_vm5 = vcmp.ne.f32.partialorder %v212_v35, %v212_v35 }
 0x1c6   :  { %v223_v38 = vsub.f32 0.0, %v222_v37 }
 0x1c8   :  { %v224_v39 = vmul.f32 1.442695, %v223_v38 }
 0x1ca   :  { %338 = vpow2.f32 %v224_v39 }
 0x1d4   :  { %v339_v40 = vpop.eup %338 }
 0x1d5   :  { %v226_v41 = vadd.f32 1.0, %v339_v40  ;;  %v229_v42 = vmul.f32 -0.5, %v339_v40  ;;  %v232_v45 = vand.u32 2147483647, %v339_v40 }
 0x1d7   :  { %340 = vlog2.f32 %v226_v41  ;;  %v230_v44 = vadd.f32 1.0, %v229_v42  ;;  %vm233_vm3 = vcmp.lt.f32.partialorder %v232_v45, 0.0004427343 }
 0x1d8   :  { %342 = vtanh.f32 %v212_v35 }
 0x1d9   :  { %v231_v49 = vmul.f32 %v339_v40, %v230_v44 }
 0x1e1   :  { %v341_v46 = vpop.eup %340 }
 0x1e2   :  { %v228_v48 = vmul.f32 0.6931472, %v341_v46  ;;  %v343_v50 = vpop.eup %342 }
 0x1e3   :  { %v218_v54 = vmul.f32 2.0, %v343_v50 }
 0x1e4   :  { %v234_v52 = vsel %vm233_vm3, %v231_v49, %v228_v48 }
 0x1e5   :  { %v235_v53 = vadd.f32 %v234_v52, %v219_v51 }
 0x1e7   :  { %v236_v55 = vsel %vm220_vm5, %v212_v35, %v235_v53 }
 0x1e8   :  { %v238_v56 = vsel %vm237_vm4, %v218_v54, %v236_v55 }
 0x1e9   :  { %239 = vst [vmem:[%s436_s5] sm:$0xff] %v238_v56 }
 0x1ea   :  { %244 = vsyncpa [#allocation3], 1 }

</bundles_post_ra>
